<compile_context>
chip_gen: v5e
topology: v5e:2x2
jax: 0.10.0
libtpu: 0.0.40
codegen_flags: <defaults>
</compile_context>

<pallas_src>
import functools

import jax
import jax.numpy as jnp
from jax import lax
from jax.experimental import pallas as pl
from jax.experimental.pallas import tpu as pltpu


def _round_up(v, m):
    return ((v + m - 1) // m) * m


def _fmm_kernel(x_ref, memt_ref, mem_ref, mn_ref, wp_ref, bp_ref, wu_ref, bu_ref,
                closest_ref, dacc_ref, *, n_valid, tile_n, tiles_per_split,
                has_padding):
    t = pl.program_id(1)

    # Per-split partial-delta accumulator: zeroed at the first tile of this split.
    @pl.when(t == 0)
    def _init():
        dacc_ref[...] = jnp.zeros_like(dacc_ref)

    x = x_ref[...]                                   # (tile_n, Din_p)
    mxu_dt = memt_ref.dtype                          # f32 (default) or bf16

    # --- projection Linear(dim_in, dim_hidden), kept f32 (exact proj/closest) ---
    proj = jnp.dot(x.astype(jnp.float32), wp_ref[...],
                   preferred_element_type=jnp.float32) + bp_ref[...]

    # --- nearest memory row: argmin_j (||m_j||^2 - 2 p.m_j) -------------------
    # (per-row ||p||^2 dropped: argmin-invariant; ||m||^2 precomputed in mn_ref;
    #  cross matmul uses the pre-transposed resident memT -> no per-step mem.T)
    cross = jnp.dot(proj.astype(mxu_dt), memt_ref[...],
                    preferred_element_type=jnp.float32)            # (tile_n, M_p)
    score = mn_ref[...] - 2.0 * cross

    tn, m = score.shape
    lane_iota = lax.broadcasted_iota(jnp.int32, (tn, m), 1)
    min_s = jnp.min(score, axis=1, keepdims=True)
    # first index attaining the minimum (torch.argmin tie-break)
    idx = jnp.min(jnp.where(score == min_s, lane_iota, m), axis=1, keepdims=True)
    onehot = (lane_iota == idx).astype(jnp.float32)                # (tile_n, M_p)

    # --- gather memory[idx] via one-hot matmul (kept f32: bit-exact closest) ---
    closest = jnp.dot(onehot, mem_ref[...], preferred_element_type=jnp.float32)
    closest_ref[...] = closest.astype(closest_ref.dtype)

    # --- memory-update Linear (rate already folded into Wu/bu by the wrapper) --
    upd = jnp.dot(proj - closest, wu_ref[...],
                  preferred_element_type=jnp.float32) + bu_ref[...]

    if has_padding:
        # Mask padded x rows out of the scatter; applied to the (tile_n, H_p) upd
        # rather than the (tile_n, M_p) one-hot (H_p << M_p).
        gstep = pl.program_id(0) * tiles_per_split + t
        row = gstep * tile_n + lax.broadcasted_iota(jnp.int32, (tn, 1), 0)
        upd = jnp.where(row < n_valid, upd, 0.0)

    # --- scatter-add: delta[j] = sum_{i: idx_i==j} upd_i  (onehot^T @ upd, MXU) -
    delta = lax.dot_general(onehot.astype(mxu_dt), upd.astype(mxu_dt),
                            (((0,), (0,)), ((), ())),
                            preferred_element_type=jnp.float32)    # (M_p, H_p)
    dacc_ref[...] += delta


def feature_memory_mapping(x, memory, wp, bp, wu, bu, rate, *, tile_n=512,
                           num_splits=2, mxu_dtype=jnp.float32,
                           vmem_limit_bytes=None):
    """Returns (closest_memory_elements, updated_memory).

    Linear weights are stored pre-transposed: wp is (dim_in, dim_hidden), wu is
    (dim_hidden, dim_hidden), so the kernel computes x @ W + b (== PyTorch Linear).
    """
    f32 = jnp.float32
    N, din = x.shape
    M, H = memory.shape

    # Lane-dense padding: every lane dimension padded to a multiple of 128.
    din_p = _round_up(din, 128)
    h_p = _round_up(H, 128)
    m_p = _round_up(M, 128)

    closest_dtype = x.dtype
    # Sublane alignment of the N tiles (8 for 32-bit, 16 for bf16, ...).
    pack = max(1, 4 // jnp.dtype(x.dtype).itemsize)
    row_align = 8 * pack
    tile_n = _round_up(max(row_align, min(int(tile_n), _round_up(N, row_align))),
                       row_align)

    # Generation-aware VMEM budget (v5e/v6e: ~96 MiB, v7x: ~48 MiB of 64 MiB).
    if vmem_limit_bytes is None:
        try:
            cap = int(pltpu.get_tpu_info().vmem_capacity_bytes)
        except Exception:
            cap = 64 * 1024 * 1024
        vmem_limit_bytes = min((cap * 3) // 4, 100 * 1024 * 1024)

    def _est_vmem(tn):
        f = 4
        resident = (2 * h_p * m_p * jnp.dtype(mxu_dtype).itemsize   # memT (2 bufs)
                    + 2 * m_p * h_p * f                             # mem
                    + 2 * din_p * h_p * f + 2 * h_p * h_p * f       # Wp, Wu
                    + 2 * 8 * m_p * f + 4 * 8 * h_p * f)            # mn, bp, bu
        acc = 2 * m_p * h_p * f                                     # delta accumulator
        stream = 2 * tn * (din_p * jnp.dtype(x.dtype).itemsize
                           + h_p * jnp.dtype(closest_dtype).itemsize)
        interm = tn * (3 * m_p + 5 * h_p) * f                       # score/onehot/proj/upd
        return resident + acc + stream + interm

    while tile_n > 2 * row_align and _est_vmem(tile_n) > vmem_limit_bytes:
        tile_n = _round_up(tile_n // 2, row_align)

    num_splits = max(1, int(num_splits))
    n_tiles = -(-N // tile_n)
    num_splits = min(num_splits, n_tiles)
    tiles_per_split = -(-n_tiles // num_splits)
    n_p = num_splits * tiles_per_split * tile_n
    has_padding = (n_p != N)

    # ---- padded operands (done once, outside the grid) ----
    x_p = jnp.zeros((n_p, din_p), x.dtype).at[:N, :din].set(x)
    mem_p = jnp.zeros((m_p, h_p), f32).at[:M, :H].set(memory.astype(f32))
    memt_p = mem_p.T.astype(mxu_dtype)                      # (H_p, M_p), hoisted transpose
    wp_p = jnp.zeros((din_p, h_p), f32).at[:din, :H].set(wp.astype(f32))
    bp_p = jnp.zeros((1, h_p), f32).at[:, :H].set(jnp.reshape(bp, (1, H)).astype(f32))
    # rate folded into the update Linear (exact restructure up to f32 rounding).
    wu_p = jnp.zeros((h_p, h_p), f32).at[:H, :H].set(wu.astype(f32) * rate)
    bu_p = jnp.zeros((1, h_p), f32).at[:, :H].set(
        jnp.reshape(bu, (1, H)).astype(f32) * rate)

    # Hoisted ||memory_j||^2; padded memory rows get a huge norm so they never win.
    mn = jnp.sum(mem_p * mem_p, axis=1)
    mn_p = jnp.where(jnp.arange(m_p) >= M, f32(1e30), mn).reshape(1, m_p)

    grid = (num_splits, tiles_per_split)
    kernel = functools.partial(_fmm_kernel, n_valid=N, tile_n=tile_n,
                               tiles_per_split=tiles_per_split,
                               has_padding=has_padding)

    resident = lambda c, t: (0, 0)      # same block every step -> stays in VMEM
    row_block = lambda c, t: (c * tiles_per_split + t, 0)

    closest_p, deltas_p = pl.pallas_call(
        kernel,
        out_shape=(jax.ShapeDtypeStruct((n_p, h_p), closest_dtype),
                   jax.ShapeDtypeStruct((num_splits * m_p, h_p), f32)),
        grid_spec=pltpu.PrefetchScalarGridSpec(
            num_scalar_prefetch=0,
            grid=grid,
            in_specs=[
                pl.BlockSpec((tile_n, din_p), row_block),   # x tile (pipelined)
                pl.BlockSpec((h_p, m_p), resident),         # memory^T (resident)
                pl.BlockSpec((m_p, h_p), resident),         # memory (resident)
                pl.BlockSpec((1, m_p), resident),           # ||memory||^2 (resident)
                pl.BlockSpec((din_p, h_p), resident),       # Wp
                pl.BlockSpec((1, h_p), resident),           # bp
                pl.BlockSpec((h_p, h_p), resident),         # rate*Wu
                pl.BlockSpec((1, h_p), resident),           # rate*bu
            ],
            out_specs=(
                pl.BlockSpec((tile_n, h_p), row_block),     # closest tile (pipelined)
                pl.BlockSpec((m_p, h_p), lambda c, t: (c, 0)),  # per-split delta acc
            ),
        ),
        compiler_params=pltpu.CompilerParams(
            # split axis shards across TensorCores (v7x); tile axis carries the
            # per-split accumulator and must stay "arbitrary".
            dimension_semantics=("parallel", "arbitrary"),
            vmem_limit_bytes=int(vmem_limit_bytes),
        ),
    )(x_p, memt_p, mem_p, mn_p, wp_p, bp_p, wu_p, bu_p)

    delta = jnp.sum(deltas_p.reshape(num_splits, m_p, h_p), axis=0)
    new_mem = (memory.astype(f32) + delta[:M, :H]).astype(memory.dtype)
    return closest_p[:N, :H], new_mem


def _reference(x, memory, wp, bp, wu, bu, rate):
    proj = x @ wp + bp
    d2 = jnp.sum((proj[:, None, :] - memory[None, :, :]) ** 2, axis=-1)
    idx = jnp.argmin(d2, axis=1)
    closest = memory[idx]
    upd = (proj - closest) @ wu + bu
    new_mem = memory.at[idx].add(rate * upd)
    return closest, new_mem


if __name__ == "__main__":
    # Small shapes consistent with the module; chosen to exercise N/M/H padding,
    # the row mask, multi-tile accumulation and the 2-way split axis
    # (grid = (2 splits, 2 tiles) with tile_n=8).
    N, DIM_IN, DIM_HIDDEN, MEM_SIZE = 21, 48, 32, 200
    RATE = 0.5

    key = jax.random.PRNGKey(0)
    k_x, k_mem, k_wp, k_bp, k_wu, k_bu = jax.random.split(key, 6)

    x = jax.random.normal(k_x, (N, DIM_IN), jnp.float32)
    memory = jax.random.normal(k_mem, (MEM_SIZE, DIM_HIDDEN), jnp.float32)
    # Linear weights stored as (in, out); biases as (out,).
    wp = jax.random.normal(k_wp, (DIM_IN, DIM_HIDDEN), jnp.float32) * 0.1
    bp = jax.random.normal(k_bp, (DIM_HIDDEN,), jnp.float32) * 0.1
    wu = jax.random.normal(k_wu, (DIM_HIDDEN, DIM_HIDDEN), jnp.float32) * 0.1
    bu = jax.random.normal(k_bu, (DIM_HIDDEN,), jnp.float32) * 0.1

    fmm = jax.jit(feature_memory_mapping,
                  static_argnames=("tile_n", "num_splits", "mxu_dtype",
                                   "vmem_limit_bytes"))
    closest, new_mem = fmm(x, memory, wp, bp, wu, bu, RATE, tile_n=8, num_splits=2)
    jax.block_until_ready((closest, new_mem))

    ref_closest, ref_new_mem = _reference(x, memory, wp, bp, wu, bu, RATE)
    assert jnp.allclose(closest, ref_closest, atol=1e-4), "closest mismatch"
    assert jnp.allclose(new_mem, ref_new_mem, atol=1e-4), "memory update mismatch"

    print("KERNEL_OK")
</pallas_src>

<mosaic_0001>
module attributes {stable_mosaic.version = 11 : i64} {
  func.func @_fmm_kernel(%arg0: i32, %arg1: i32, %arg2: memref<8x128xf32, #tpu.memory_space<vmem>>, %arg3: memref<128x256xf32, #tpu.memory_space<vmem>>, %arg4: memref<256x128xf32, #tpu.memory_space<vmem>>, %arg5: memref<1x256xf32, #tpu.memory_space<vmem>>, %arg6: memref<128x128xf32, #tpu.memory_space<vmem>>, %arg7: memref<1x128xf32, #tpu.memory_space<vmem>>, %arg8: memref<128x128xf32, #tpu.memory_space<vmem>>, %arg9: memref<1x128xf32, #tpu.memory_space<vmem>>, %arg10: memref<8x128xf32, #tpu.memory_space<vmem>>, %arg11: memref<256x128xf32, #tpu.memory_space<vmem>>) attributes {dimension_semantics = [#tpu.dimension_semantics<parallel>, #tpu.dimension_semantics<arbitrary>], iteration_bounds = array<i64: 2, 2>, scalar_prefetch = 0 : i64, scratch_operands = 0 : i64, tpu.core_type = #tpu.core_type<tc>, window_params = [{transform_indices = @transform_0, window_bounds = array<i64: 8, 128>}, {pipeline_mode = #tpu.pipeline_mode<synchronous>, transform_indices = @transform_1, window_bounds = array<i64: 128, 256>}, {pipeline_mode = #tpu.pipeline_mode<synchronous>, transform_indices = @transform_2, window_bounds = array<i64: 256, 128>}, {pipeline_mode = #tpu.pipeline_mode<synchronous>, transform_indices = @transform_3, window_bounds = array<i64: 1, 256>}, {pipeline_mode = #tpu.pipeline_mode<synchronous>, transform_indices = @transform_4, window_bounds = array<i64: 128, 128>}, {pipeline_mode = #tpu.pipeline_mode<synchronous>, transform_indices = @transform_5, window_bounds = array<i64: 1, 128>}, {pipeline_mode = #tpu.pipeline_mode<synchronous>, transform_indices = @transform_6, window_bounds = array<i64: 128, 128>}, {pipeline_mode = #tpu.pipeline_mode<synchronous>, transform_indices = @transform_7, window_bounds = array<i64: 1, 128>}, {transform_indices = @transform_8, window_bounds = array<i64: 8, 128>}, {transform_indices = @transform_9, window_bounds = array<i64: 256, 128>}]} {
    %c0_i32 = arith.constant 0 : i32
    %0 = arith.cmpi eq, %arg1, %c0_i32 : i32
    %1 = arith.extui %0 : i1 to i32
    %c0_i32_0 = arith.constant 0 : i32
    %2 = arith.cmpi ne, %1, %c0_i32_0 : i32
    scf.if %2 {
      %cst_30 = arith.constant 0.000000e+00 : f32
      %54 = vector.broadcast %cst_30 : f32 to vector<256x128xf32>
      %c0_31 = arith.constant 0 : index
      %c0_32 = arith.constant 0 : index
      %55 = vector.load %arg11[%c0_31, %c0_32] : memref<256x128xf32, #tpu.memory_space<vmem>>, vector<256x128xf32>
      tpu.vector_store %arg11[%c0_31, %c0_32], %54 {strides = array<i32>} : memref<256x128xf32, #tpu.memory_space<vmem>>, vector<256x128xf32>,
    } else {
    }
    %c0 = arith.constant 0 : index
    %c0_1 = arith.constant 0 : index
    %3 = vector.load %arg2[%c0, %c0_1] : memref<8x128xf32, #tpu.memory_space<vmem>>, vector<8x128xf32>
    %c0_2 = arith.constant 0 : index
    %c0_3 = arith.constant 0 : index
    %4 = vector.load %arg6[%c0_2, %c0_3] : memref<128x128xf32, #tpu.memory_space<vmem>>, vector<128x128xf32>
    %cst = arith.constant dense<0.000000e+00> : vector<8x128xf32>
    %5 = tpu.matmul %3, %4, %cst {dimension_numbers = #tpu.dot_dimension_numbers<[1], [0], [0], [1], [0, 0, 1, 1], [], []>} : vector<8x128xf32>, vector<128x128xf32>, vector<8x128xf32> -> vector<8x128xf32>
    %c0_4 = arith.constant 0 : index
    %c0_5 = arith.constant 0 : index
    %6 = vector.load %arg7[%c0_4, %c0_5] : memref<1x128xf32, #tpu.memory_space<vmem>>, vector<1x128xf32>
    %7 = vector.broadcast %6 : vector<1x128xf32> to vector<8x128xf32>
    %8 = arith.addf %5, %7 : vector<8x128xf32>
    %c0_6 = arith.constant 0 : index
    %c0_7 = arith.constant 0 : index
    %9 = vector.load %arg3[%c0_6, %c0_7] : memref<128x256xf32, #tpu.memory_space<vmem>>, vector<128x256xf32>
    %cst_8 = arith.constant dense<0.000000e+00> : vector<8x256xf32>
    %10 = tpu.matmul %8, %9, %cst_8 {dimension_numbers = #tpu.dot_dimension_numbers<[1], [0], [0], [1], [0, 0, 1, 1], [], []>} : vector<8x128xf32>, vector<128x256xf32>, vector<8x256xf32> -> vector<8x256xf32>
    %c0_9 = arith.constant 0 : index
    %c0_10 = arith.constant 0 : index
    %11 = vector.load %arg5[%c0_9, %c0_10] : memref<1x256xf32, #tpu.memory_space<vmem>>, vector<1x256xf32>
    %cst_11 = arith.constant 2.000000e+00 : f32
    %12 = vector.broadcast %cst_11 : f32 to vector<8x256xf32>
    %13 = arith.mulf %12, %10 : vector<8x256xf32>
    %14 = vector.broadcast %11 : vector<1x256xf32> to vector<8x256xf32>
    %15 = arith.subf %14, %13 : vector<8x256xf32>
    %16 = tpu.iota {dimensions = array<i32: 1>} : vector<8x256xi32>
    %cst_12 = arith.constant dense<0x7F800000> : vector<8xf32>
    %17 = vector.multi_reduction <minimumf>, %15, %cst_12 [1] : vector<8x256xf32> to vector<8xf32>
    %18 = vector.shape_cast %17 : vector<8xf32> to vector<8x1xf32>
    %19 = vector.broadcast %18 : vector<8x1xf32> to vector<8x256xf32>
    %20 = arith.cmpf oeq, %15, %19 : vector<8x256xf32>
    %c256_i32 = arith.constant 256 : i32
    %21 = vector.broadcast %c256_i32 : i32 to vector<8x256xi32>
    %22 = arith.select %20, %16, %21 : vector<8x256xi1>, vector<8x256xi32>
    %cst_13 = arith.constant dense<2147483647> : vector<8xi32>
    %23 = vector.multi_reduction <minsi>, %22, %cst_13 [1] : vector<8x256xi32> to vector<8xi32>
    %24 = vector.shape_cast %23 : vector<8xi32> to vector<8x1xi32>
    %25 = vector.broadcast %24 : vector<8x1xi32> to vector<8x256xi32>
    %26 = arith.cmpi eq, %16, %25 : vector<8x256xi32>
    %27 = arith.extui %26 : vector<8x256xi1> to vector<8x256xi32>
    %28 = arith.sitofp %27 : vector<8x256xi32> to vector<8x256xf32>
    %c0_14 = arith.constant 0 : index
    %c0_15 = arith.constant 0 : index
    %29 = vector.load %arg4[%c0_14, %c0_15] : memref<256x128xf32, #tpu.memory_space<vmem>>, vector<256x128xf32>
    %cst_16 = arith.constant dense<0.000000e+00> : vector<8x128xf32>
    %30 = tpu.matmul %28, %29, %cst_16 {dimension_numbers = #tpu.dot_dimension_numbers<[1], [0], [0], [1], [0, 0, 1, 1], [], []>} : vector<8x256xf32>, vector<256x128xf32>, vector<8x128xf32> -> vector<8x128xf32>
    %c0_17 = arith.constant 0 : index
    %c0_18 = arith.constant 0 : index
    %31 = vector.load %arg10[%c0_17, %c0_18] : memref<8x128xf32, #tpu.memory_space<vmem>>, vector<8x128xf32>
    tpu.vector_store %arg10[%c0_17, %c0_18], %30 {strides = array<i32>} : memref<8x128xf32, #tpu.memory_space<vmem>>, vector<8x128xf32>,
    %32 = arith.subf %8, %30 : vector<8x128xf32>
    %c0_19 = arith.constant 0 : index
    %c0_20 = arith.constant 0 : index
    %33 = vector.load %arg8[%c0_19, %c0_20] : memref<128x128xf32, #tpu.memory_space<vmem>>, vector<128x128xf32>
    %cst_21 = arith.constant dense<0.000000e+00> : vector<8x128xf32>
    %34 = tpu.matmul %32, %33, %cst_21 {dimension_numbers = #tpu.dot_dimension_numbers<[1], [0], [0], [1], [0, 0, 1, 1], [], []>} : vector<8x128xf32>, vector<128x128xf32>, vector<8x128xf32> -> vector<8x128xf32>
    %c0_22 = arith.constant 0 : index
    %c0_23 = arith.constant 0 : index
    %35 = vector.load %arg9[%c0_22, %c0_23] : memref<1x128xf32, #tpu.memory_space<vmem>>, vector<1x128xf32>
    %36 = vector.broadcast %35 : vector<1x128xf32> to vector<8x128xf32>
    %37 = arith.addf %34, %36 : vector<8x128xf32>
    %c2_i32 = arith.constant 2 : i32
    %38 = arith.muli %arg0, %c2_i32 : i32
    %39 = arith.addi %38, %arg1 : i32
    %c8_i32 = arith.constant 8 : i32
    %40 = arith.muli %39, %c8_i32 : i32
    %41 = tpu.iota {dimensions = array<i32: 0>} : vector<8x1xi32>
    %42 = vector.broadcast %40 : i32 to vector<8x1xi32>
    %43 = arith.addi %42, %41 : vector<8x1xi32>
    %c21_i32 = arith.constant 21 : i32
    %44 = vector.broadcast %c21_i32 : i32 to vector<8x1xi32>
    %45 = arith.cmpi slt, %43, %44 : vector<8x1xi32>
    %cst_24 = arith.constant 0.000000e+00 : f32
    %46 = vector.shape_cast %45 : vector<8x1xi1> to vector<8x1xi1>
    %47 = vector.broadcast %46 : vector<8x1xi1> to vector<8x128xi1>
    %48 = vector.broadcast %cst_24 : f32 to vector<8x128xf32>
    %49 = arith.select %47, %37, %48 : vector<8x128xi1>, vector<8x128xf32>
    %cst_25 = arith.constant dense<0.000000e+00> : vector<256x128xf32>
    %50 = tpu.matmul %28, %49, %cst_25 {dimension_numbers = #tpu.dot_dimension_numbers<[0], [0], [1], [1], [0, 1, 1, 1], [], []>} : vector<8x256xf32>, vector<8x128xf32>, vector<256x128xf32> -> vector<256x128xf32>
    %c0_26 = arith.constant 0 : index
    %c0_27 = arith.constant 0 : index
    %51 = vector.load %arg11[%c0_26, %c0_27] : memref<256x128xf32, #tpu.memory_space<vmem>>, vector<256x128xf32>
    %52 = arith.addf %51, %50 : vector<256x128xf32>
    %c0_28 = arith.constant 0 : index
    %c0_29 = arith.constant 0 : index
    %53 = vector.load %arg11[%c0_28, %c0_29] : memref<256x128xf32, #tpu.memory_space<vmem>>, vector<256x128xf32>
    tpu.vector_store %arg11[%c0_28, %c0_29], %52 {strides = array<i32>} : memref<256x128xf32, #tpu.memory_space<vmem>>, vector<256x128xf32>,
    return
  }
  func.func @transform_0(%arg0: i32, %arg1: i32) -> (i32, i32) {
    %c2_i32 = arith.constant 2 : i32
    %0 = arith.muli %arg0, %c2_i32 : i32
    %1 = arith.addi %0, %arg1 : i32
    %c0_i32 = arith.constant 0 : i32
    %c0_i32_0 = arith.constant 0 : i32
    return %1, %c0_i32 : i32, i32
  }
  func.func @transform_1(%arg0: i32, %arg1: i32) -> (i32, i32) {
    %c0_i32 = arith.constant 0 : i32
    %c0_i32_0 = arith.constant 0 : i32
    %c0_i32_1 = arith.constant 0 : i32
    return %c0_i32, %c0_i32_0 : i32, i32
  }
  func.func @transform_2(%arg0: i32, %arg1: i32) -> (i32, i32) {
    %c0_i32 = arith.constant 0 : i32
    %c0_i32_0 = arith.constant 0 : i32
    %c0_i32_1 = arith.constant 0 : i32
    return %c0_i32, %c0_i32_0 : i32, i32
  }
  func.func @transform_3(%arg0: i32, %arg1: i32) -> (i32, i32) {
    %c0_i32 = arith.constant 0 : i32
    %c0_i32_0 = arith.constant 0 : i32
    %c0_i32_1 = arith.constant 0 : i32
    return %c0_i32, %c0_i32_0 : i32, i32
  }
  func.func @transform_4(%arg0: i32, %arg1: i32) -> (i32, i32) {
    %c0_i32 = arith.constant 0 : i32
    %c0_i32_0 = arith.constant 0 : i32
    %c0_i32_1 = arith.constant 0 : i32
    return %c0_i32, %c0_i32_0 : i32, i32
  }
  func.func @transform_5(%arg0: i32, %arg1: i32) -> (i32, i32) {
    %c0_i32 = arith.constant 0 : i32
    %c0_i32_0 = arith.constant 0 : i32
    %c0_i32_1 = arith.constant 0 : i32
    return %c0_i32, %c0_i32_0 : i32, i32
  }
  func.func @transform_6(%arg0: i32, %arg1: i32) -> (i32, i32) {
    %c0_i32 = arith.constant 0 : i32
    %c0_i32_0 = arith.constant 0 : i32
    %c0_i32_1 = arith.constant 0 : i32
    return %c0_i32, %c0_i32_0 : i32, i32
  }
  func.func @transform_7(%arg0: i32, %arg1: i32) -> (i32, i32) {
    %c0_i32 = arith.constant 0 : i32
    %c0_i32_0 = arith.constant 0 : i32
    %c0_i32_1 = arith.constant 0 : i32
    return %c0_i32, %c0_i32_0 : i32, i32
  }
  func.func @transform_8(%arg0: i32, %arg1: i32) -> (i32, i32) {
    %c2_i32 = arith.constant 2 : i32
    %0 = arith.muli %arg0, %c2_i32 : i32
    %1 = arith.addi %0, %arg1 : i32
    %c0_i32 = arith.constant 0 : i32
    %c0_i32_0 = arith.constant 0 : i32
    return %1, %c0_i32 : i32, i32
  }
  func.func @transform_9(%arg0: i32, %arg1: i32) -> (i32, i32) {
    %c0_i32 = arith.constant 0 : i32
    %c0_i32_0 = arith.constant 0 : i32
    return %arg0, %c0_i32 : i32, i32
  }
}

</mosaic_0001>

<bundles_post_ra>
// kernel: feature_memory_mapping.1
= control target key start
LH: loop header
LB: loop body
LE: loop exit
PB: predicated region body
PF: predicated region fallthrough
CT: control target
= control target key end

     0   :  { %s1449_s30 = smov 0   ;;  %s1451_s10 = smov 0   ;;  %s1981_s0 = inlined_call_operand.vmem [shape: f32[32,128], index: 0, kind: input, shape index: {}]   ;;  %s1982_s1 = inlined_call_operand.vmem [shape: f32[128,256], index: 1, kind: input, shape index: {}]   ;;  %s1983_s2 = inlined_call_operand.vmem [shape: f32[256,128], index: 2, kind: input, shape index: {}]   ;;  %s1984_s3 = inlined_call_operand.vmem [shape: f32[1,256], index: 3, kind: input, shape index: {}]   ;;  %s1985_s4 = inlined_call_operand.vmem [shape: f32[128,128], index: 4, kind: input, shape index: {}]   ;;  %s1986_s5 = inlined_call_operand.vmem [shape: f32[1,128], index: 5, kind: input, shape index: {}]   ;;  %s1987_s6 = inlined_call_operand.vmem [shape: f32[128,128], index: 6, kind: input, shape index: {}]   ;;  %s1988_s7 = inlined_call_operand.vmem [shape: f32[1,128], index: 7, kind: input, shape index: {}]   ;;  %s1989_s8 = inlined_call_operand.vmem [shape: f32[32,128], index: 8, kind: output, shape index: {0}]   ;;  %s1990_s9 = inlined_call_operand.vmem [shape: f32[512,128], index: 9, kind: output, shape index: {1}]  }
   0x1   :  { %s1453_s11 = smov 0   ;;  %s1455_s12 = smov 0  }
   0x2   :  { %s1457_s13 = smov 0  }
   0x3 LB: > { %s29_s14 = sadd.s32 1, %s1386_s11  ;;  %s32_s15 = sadd.s32 1, %s1390_s12  ;;  %s1394_s13 = sphi %s1457_s13, %s20_s13   ;;  %s1390_s12 = sphi %s1455_s12, %s1994_s12   ;;  %s1386_s11 = sphi %s1453_s11, %s1993_s11   ;;  %s1382_s10 = sphi %s1451_s10, %s1992_s10   ;;  %s1378_s30 = sphi %s1449_s30, %s1991_s30  }
   0x4   : > { %p30_p0 = scmp.ge.s32.totalorder %s29_s14, 2  ;;  %p1177_p1 = scmp.ge.s32.totalorder %s1394_s13, 1 }
   0x5   : > { %p313_p2 = scmp.lt.s32.totalorder %s1394_s13, 5 }
   0x6   : > { %s1996_s14 = smov (%p30_p0, %s29_s14), 0  ;;  %s1998_s15 = smov (!%p30_p0, %s32_s15), %s1390_s12 }
   0x7   : > { %p314_p3 = pnand %p1177_p1, %p313_p2  ;;  %p34_p4 = scmp.ge.s32.totalorder %s1998_s15, 2 }
   0x8   : > { %s1178_s16 = sshll.u32 (!%p314_p3), %s1382_s10, 1  ;;  %s1182_s17 = sshll.u32 (!%p314_p3), %s1382_s10, 5 }
   0x9   : > { %s2000_s15 = smov (%p34_p4, %s1998_s15), 0  ;;  %317 = sbr.rel (%p314_p3) target bundleno = 1188 (0x4a4), region = 52 }
   0xa   : > { %s1479_s18 = sadd.s32 (!%p314_p3), %s1378_s30, %s1178_s16  ;;  %p373_p5 = scmp.lt.s32.totalorder (!%p314_p3), %s1182_s17, 63 }
   0xb   : > { %p358_p6 = scmp.lt.s32.totalorder (!%p314_p3), %s1479_s18, 3  ;;  %p1184_p7 = scmp.ne.s32.totalorder (!%p314_p3), %s1378_s30, 0 }
   0xe   : > { %s2002_s17 = smov (!%p373_p5, %s1182_s17), 63  ;;  %381 = sbr.rel (%p1184_p7) target bundleno = 52 (0x34), region = 56 }
   0xf   : > { %s359_s19 = scalar_select %p358_p6, %s1479_s18, 3 }
  0x10   : > { %s1183_s20 = sshll.u32 %s2002_s17, 3 }
  0x11   : > { %s1179_s21 = sshll.u32 %s359_s19, 3  ;;  %s1486_s24 = scalar_lea.vmem %s1990_s9, %s1183_s20 }
  0x12   : > { %s1491_s27 = scalar_lea.vmem %s1981_s0, %s1179_s21  ;;  %s1496_s10 = scalar_lea.vmem %s1989_s8, %s1179_s21 }
  0x13   : > { %v1396_v0 = vmov 0.0  }
  0x14   : > { %382 = vst [vmem:[%s1486_s24] sm:$0xff] %v1396_v0 }
  0x15   : > { %383 = vst [vmem:[%s1486_s24 + $0x8] sm:$0xff] %v1396_v0 }
  0x16   : > { %384 = vst [vmem:[%s1486_s24 + $0x10] sm:$0xff] %v1396_v0 }
  0x17   : > { %385 = vst [vmem:[%s1486_s24 + $0x18] sm:$0xff] %v1396_v0 }
  0x18   : > { %386 = vst [vmem:[%s1486_s24 + $0x20] sm:$0xff] %v1396_v0 }
  0x19   : > { %387 = vst [vmem:[%s1486_s24 + $0x28] sm:$0xff] %v1396_v0 }
  0x1a   : > { %388 = vst [vmem:[%s1486_s24 + $0x30] sm:$0xff] %v1396_v0 }
  0x1b   : > { %389 = vst [vmem:[%s1486_s24 + $0x38] sm:$0xff] %v1396_v0 }
  0x1c   : > { %390 = vst [vmem:[%s1486_s24 + $0x40] sm:$0xff] %v1396_v0 }
  0x1d   : > { %391 = vst [vmem:[%s1486_s24 + $0x48] sm:$0xff] %v1396_v0 }
  0x1e   : > { %392 = vst [vmem:[%s1486_s24 + $0x50] sm:$0xff] %v1396_v0 }
  0x1f   : > { %393 = vst [vmem:[%s1486_s24 + $0x58] sm:$0xff] %v1396_v0 }
  0x20   : > { %394 = vst [vmem:[%s1486_s24 + $0x60] sm:$0xff] %v1396_v0 }
  0x21   : > { %395 = vst [vmem:[%s1486_s24 + $0x68] sm:$0xff] %v1396_v0 }
  0x22   : > { %396 = vst [vmem:[%s1486_s24 + $0x70] sm:$0xff] %v1396_v0 }
  0x23   : > { %397 = vst [vmem:[%s1486_s24 + $0x78] sm:$0xff] %v1396_v0 }
  0x24   : > { %398 = vst [vmem:[%s1486_s24 + $0x80] sm:$0xff] %v1396_v0 }
  0x25   : > { %399 = vst [vmem:[%s1486_s24 + $0x88] sm:$0xff] %v1396_v0 }
  0x26   : > { %400 = vst [vmem:[%s1486_s24 + $0x90] sm:$0xff] %v1396_v0 }
  0x27   : > { %401 = vst [vmem:[%s1486_s24 + $0x98] sm:$0xff] %v1396_v0 }
  0x28   : > { %402 = vst [vmem:[%s1486_s24 + $0xa0] sm:$0xff] %v1396_v0 }
  0x29   : > { %403 = vst [vmem:[%s1486_s24 + $0xa8] sm:$0xff] %v1396_v0 }
  0x2a   : > { %404 = vst [vmem:[%s1486_s24 + $0xb0] sm:$0xff] %v1396_v0 }
  0x2b   : > { %405 = vst [vmem:[%s1486_s24 + $0xb8] sm:$0xff] %v1396_v0 }
  0x2c   : > { %406 = vst [vmem:[%s1486_s24 + $0xc0] sm:$0xff] %v1396_v0 }
  0x2d   : > { %407 = vst [vmem:[%s1486_s24 + $0xc8] sm:$0xff] %v1396_v0 }
  0x2e   : > { %408 = vst [vmem:[%s1486_s24 + $0xd0] sm:$0xff] %v1396_v0 }
  0x2f   : > { %409 = vst [vmem:[%s1486_s24 + $0xd8] sm:$0xff] %v1396_v0 }
  0x30   : > { %410 = vst [vmem:[%s1486_s24 + $0xe0] sm:$0xff] %v1396_v0 }
  0x31   : > { %411 = vst [vmem:[%s1486_s24 + $0xe8] sm:$0xff] %v1396_v0 }
  0x32   : > { %412 = vst [vmem:[%s1486_s24 + $0xf0] sm:$0xff] %v1396_v0 }
  0x33   : > { %413 = vst [vmem:[%s1486_s24 + $0xf8] sm:$0xff] %v1396_v0 }
  0x34 PF: > { %v430_v1 = vld [vmem:[%s1985_s4 + $0x78] sm:$0xff]  ;;  %v429_v2 = vld [vmem:[%s1985_s4 + $0x70] sm:$0xff]  ;;  %v428_v3 = vld [vmem:[%s1985_s4 + $0x68] sm:$0xff]  ;;  %v537_v63 = vlaneseq  ;;  %vm758_vm7 = vcmask 64512  }
  0x35   : > { %435 = vmatpush.msra.mxu0 %v430_v1  ;;  %v427_v4 = vld [vmem:[%s1985_s4 + $0x60] sm:$0xff]  ;;  %v426_v5 = vld [vmem:[%s1985_s4 + $0x58] sm:$0xff]  ;;  %v485_v6 = vld [vmem:[%s1982_s1 + $0xf0] sm:$0xff] }
  0x36   : > { %487 = vmatpush.msra.mxu1 %v485_v6  ;;  %v486_v7 = vld [vmem:[%s1982_s1 + $0xf8] sm:$0xff]  ;;  %v483_v8 = vld [vmem:[%s1982_s1 + $0xe0] sm:$0xff]  ;;  %v484_v9 = vld [vmem:[%s1982_s1 + $0xe8] sm:$0xff]  ;;  %v1686_v0 = vand.u32 127, %v537_v63 }
  0x37   : > { %436 = vmatpush.msra.mxu0 %v429_v2  ;;  %507 = vmatpush.msra.mxu2 %v486_v7  ;;  %v481_v10 = vld [vmem:[%s1982_s1 + $0xd0] sm:$0xff]  ;;  %v482_v12 = vld [vmem:[%s1982_s1 + $0xd8] sm:$0xff]  ;;  %v479_v13 = vld [vmem:[%s1982_s1 + $0xc0] sm:$0xff] }
  0x38   : > { %v425_v11 = vld [vmem:[%s1985_s4 + $0x50] sm:$0xff]  ;;  %488 = vmatpush.msra.mxu1 %v483_v8  ;;  %v424_v14 = vld [vmem:[%s1985_s4 + $0x48] sm:$0xff]  ;;  %v423_v17 = vld [vmem:[%s1985_s4 + $0x40] sm:$0xff]  ;;  %v1689_v1 = vadd.s32 128, %v1686_v0 }
  0x39   : > { %437 = vmatpush.msra.mxu0 %v428_v3  ;;  %508 = vmatpush.msra.mxu2 %v484_v9  ;;  %v480_v15 = vld [vmem:[%s1982_s1 + $0xc8] sm:$0xff]  ;;  %v477_v16 = vld [vmem:[%s1982_s1 + $0xb0] sm:$0xff]  ;;  %v478_v18 = vld [vmem:[%s1982_s1 + $0xb8] sm:$0xff] }
  0x3a   : > { %489 = vmatpush.msra.mxu1 %v481_v10  ;;  %v475_v19 = vld [vmem:[%s1982_s1 + $0xa0] sm:$0xff]  ;;  %v422_v20 = vld [vmem:[%s1985_s4 + $0x38] sm:$0xff]  ;;  %v476_v21 = vld [vmem:[%s1982_s1 + $0xa8] sm:$0xff] }
  0x3b   : > { %438 = vmatpush.msra.mxu0 %v427_v4  ;;  %509 = vmatpush.msra.mxu2 %v482_v12  ;;  %v473_v22 = vld [vmem:[%s1982_s1 + $0x90] sm:$0xff]  ;;  %v474_v24 = vld [vmem:[%s1982_s1 + $0x98] sm:$0xff]  ;;  %v471_v25 = vld [vmem:[%s1982_s1 + $0x80] sm:$0xff] }
  0x3c   : > { %490 = vmatpush.msra.mxu1 %v479_v13  ;;  %v421_v23 = vld [vmem:[%s1985_s4 + $0x30] sm:$0xff]  ;;  %v420_v26 = vld [vmem:[%s1985_s4 + $0x28] sm:$0xff]  ;;  %v419_v29 = vld [vmem:[%s1985_s4 + $0x20] sm:$0xff] }
  0x3d   : > { %439 = vmatpush.msra.mxu0 %v426_v5  ;;  %510 = vmatpush.msra.mxu2 %v480_v15  ;;  %v472_v27 = vld [vmem:[%s1982_s1 + $0x88] sm:$0xff]  ;;  %v469_v28 = vld [vmem:[%s1982_s1 + $0x70] sm:$0xff]  ;;  %v470_v30 = vld [vmem:[%s1982_s1 + $0x78] sm:$0xff] }
  0x3e   : > { %491 = vmatpush.msra.mxu1 %v477_v16  ;;  %v467_v31 = vld [vmem:[%s1982_s1 + $0x60] sm:$0xff]  ;;  %v418_v32 = vld [vmem:[%s1985_s4 + $0x18] sm:$0xff]  ;;  %v468_v33 = vld [vmem:[%s1982_s1 + $0x68] sm:$0xff] }
  0x3f   : > { %440 = vmatpush.msra.mxu0 %v425_v11  ;;  %511 = vmatpush.msra.mxu2 %v478_v18  ;;  %v465_v34 = vld [vmem:[%s1982_s1 + $0x50] sm:$0xff]  ;;  %v466_v36 = vld [vmem:[%s1982_s1 + $0x58] sm:$0xff]  ;;  %v463_v37 = vld [vmem:[%s1982_s1 + $0x40] sm:$0xff] }
  0x40   : > { %492 = vmatpush.msra.mxu1 %v475_v19  ;;  %v417_v35 = vld [vmem:[%s1985_s4 + $0x10] sm:$0xff]  ;;  %v416_v38 = vld [vmem:[%s1985_s4 + $0x8] sm:$0xff]  ;;  %v415_v41 = vld [vmem:[%s1985_s4] sm:$0xff] }
  0x41   : > { %441 = vmatpush.msra.mxu0 %v424_v14  ;;  %512 = vmatpush.msra.mxu2 %v476_v21  ;;  %v464_v39 = vld [vmem:[%s1982_s1 + $0x48] sm:$0xff]  ;;  %v461_v40 = vld [vmem:[%s1982_s1 + $0x30] sm:$0xff]  ;;  %v462_v42 = vld [vmem:[%s1982_s1 + $0x38] sm:$0xff] }
  0x42   : > { %493 = vmatpush.msra.mxu1 %v473_v22  ;;  %v414_v43 = vld [vmem:[%s1491_s27] sm:$0xff]  ;;  %v460_v45 = vld [vmem:[%s1982_s1 + $0x28] sm:$0xff]  ;;  %v457_v46 = vld [vmem:[%s1982_s1 + $0x10] sm:$0xff] }
  0x43   : > { %442 = vmatpush.msra.mxu0 %v423_v17  ;;  %513 = vmatpush.msra.mxu2 %v474_v24  ;;  %v459_v44 = vld [vmem:[%s1982_s1 + $0x20] sm:$0xff]  ;;  %v458_v47 = vld [vmem:[%s1982_s1 + $0x18] sm:$0xff]  ;;  %v456_v49 = vld [vmem:[%s1982_s1 + $0x8] sm:$0xff] }
  0x44   : > { %494 = vmatpush.msra.mxu1 %v471_v25  ;;  %v455_v48 = vld [vmem:[%s1982_s1] sm:$0xff]  ;;  %v584_v8 = vld [vmem:[%s1983_s2 + $0x78] sm:$0xff]  ;;  %v583_v10 = vld [vmem:[%s1983_s2 + $0x70] sm:$0xff] }
  0x45   : > { %443 = vmatpush.msra.mxu0 %v422_v20  ;;  %514 = vmatpush.msra.mxu2 %v472_v27  ;;  %v1354_v50 = vld [vmem:[%s1986_s5] ss:$0 sm:$0xff]  ;;  %v600_v9 = vld [vmem:[%s1983_s2 + $0xf8] sm:$0xff]  ;;  %v599_v11 = vld [vmem:[%s1983_s2 + $0xf0] sm:$0xff] }
  0x46   : > { %495 = vmatpush.msra.mxu1 %v469_v28  ;;  %v527_v54 = vld [vmem:[%s1984_s3] sm:$0x3]  ;;  %601 = vmatpush.msra.mxu3 %v584_v8  ;;  %v582_v12 = vld [vmem:[%s1983_s2 + $0x68] sm:$0xff]  ;;  %v580_v16 = vld [vmem:[%s1983_s2 + $0x58] sm:$0xff] }
  0x47   : > { %444 = vmatpush.msra.mxu0 %v421_v23  ;;  %515 = vmatpush.msra.mxu2 %v470_v30  ;;  %v531_v56 = vperm.slane %v527_v54, 0  ;;  %v532_v57 = vperm.slane %v527_v54, 1  ;;  %v598_v13 = vld [vmem:[%s1983_s2 + $0xe8] sm:$0xff]  ;;  %v581_v14 = vld [vmem:[%s1983_s2 + $0x60] sm:$0xff]  ;;  %v596_v17 = vld [vmem:[%s1983_s2 + $0xd8] sm:$0xff] }
  0x48   : > { %496 = vmatpush.msra.mxu1 %v467_v31  ;;  %602 = vmatpush.msra.mxu3 %v583_v10  ;;  %v597_v15 = vld [vmem:[%s1983_s2 + $0xe0] sm:$0xff]  ;;  %v579_v18 = vld [vmem:[%s1983_s2 + $0x50] sm:$0xff]  ;;  %v578_v20 = vld [vmem:[%s1983_s2 + $0x48] sm:$0xff] }
  0x49   : > { %445 = vmatpush.msra.mxu0 %v420_v26  ;;  %516 = vmatpush.msra.mxu2 %v468_v33  ;;  %v595_v19 = vld [vmem:[%s1983_s2 + $0xd0] sm:$0xff]  ;;  %v594_v21 = vld [vmem:[%s1983_s2 + $0xc8] sm:$0xff]  ;;  %v577_v22 = vld [vmem:[%s1983_s2 + $0x40] sm:$0xff] }
  0x4a   : > { %497 = vmatpush.msra.mxu1 %v465_v34  ;;  %603 = vmatpush.msra.mxu3 %v582_v12  ;;  %v593_v23 = vld [vmem:[%s1983_s2 + $0xc0] sm:$0xff]  ;;  %v576_v24 = vld [vmem:[%s1983_s2 + $0x38] sm:$0xff]  ;;  %v575_v26 = vld [vmem:[%s1983_s2 + $0x30] sm:$0xff] }
  0x4b   : > { %446 = vmatpush.msra.mxu0 %v419_v29  ;;  %517 = vmatpush.msra.mxu2 %v466_v36  ;;  %v592_v25 = vld [vmem:[%s1983_s2 + $0xb8] sm:$0xff]  ;;  %v591_v27 = vld [vmem:[%s1983_s2 + $0xb0] sm:$0xff]  ;;  %v574_v28 = vld [vmem:[%s1983_s2 + $0x28] sm:$0xff] }
  0x4c   : > { %498 = vmatpush.msra.mxu1 %v463_v37  ;;  %604 = vmatpush.msra.mxu3 %v581_v14  ;;  %v590_v29 = vld [vmem:[%s1983_s2 + $0xa8] sm:$0xff]  ;;  %v573_v30 = vld [vmem:[%s1983_s2 + $0x20] sm:$0xff]  ;;  %v588_v33 = vld [vmem:[%s1983_s2 + $0x98] sm:$0xff] }
  0x4d   : > { %447 = vmatpush.msra.mxu0 %v418_v32  ;;  %518 = vmatpush.msra.mxu2 %v464_v39  ;;  %v589_v31 = vld [vmem:[%s1983_s2 + $0xa0] sm:$0xff]  ;;  %v572_v32 = vld [vmem:[%s1983_s2 + $0x18] sm:$0xff]  ;;  %v587_v39 = vld [vmem:[%s1983_s2 + $0x90] sm:$0xff] }
  0x4e   : > { %499 = vmatpush.msra.mxu1 %v461_v40  ;;  %605 = vmatpush.msra.mxu3 %v580_v16  ;;  %v570_v40 = vld [vmem:[%s1983_s2 + $0x8] sm:$0xff]  ;;  %v649_v54 = vld [vmem:[%s1987_s6 + $0x30] sm:$0xff] }
  0x4f   : > { %448 = vmatpush.msra.mxu0 %v417_v35  ;;  %519 = vmatpush.msra.mxu2 %v462_v42  ;;  %v569_v42 = vld [vmem:[%s1983_s2] sm:$0xff] }
  0x50   : > { %500 = vmatpush.msra.mxu1 %v459_v44  ;;  %606 = vmatpush.msra.mxu3 %v579_v18  ;;  %v658_v44 = vld [vmem:[%s1987_s6 + $0x78] sm:$0xff] }
  0x51   : > { %449 = vmatpush.msra.mxu0 %v416_v38  ;;  %520 = vmatpush.msra.mxu2 %v460_v45  ;;  %v571_v38 = vld [vmem:[%s1983_s2 + $0x10] sm:$0xff] }
  0x52   : > { %501 = vmatpush.msra.mxu1 %v457_v46  ;;  %607 = vmatpush.msra.mxu3 %v578_v20  ;;  %v657_v45 = vld [vmem:[%s1987_s6 + $0x70] sm:$0xff]  ;;  %v656_v46 = vld [vmem:[%s1987_s6 + $0x68] sm:$0xff] }
  0x53   : > { %450 = vmatpush.msra.mxu0 %v415_v41  ;;  %521 = vmatpush.msra.mxu2 %v458_v47  ;;  %v586_v41 = vld [vmem:[%s1983_s2 + $0x88] sm:$0xff]  ;;  %v655_v47 = vld [vmem:[%s1987_s6 + $0x60] sm:$0xff] }
  0x54   : > { %451 = vmatmul.f32.vlgmr.msra.gmra.mxu0 %v414_v43  ;;  %502 = vmatpush.msra.mxu1 %v455_v48  ;;  %v585_v43 = vld [vmem:[%s1983_s2 + $0x80] sm:$0xff]  ;;  %v654_v48 = vld [vmem:[%s1987_s6 + $0x58] sm:$0xff] }
  0x55   : > { %522 = vmatpush.msra.mxu2 %v456_v49  ;;  %621 = vmatpush.msrb.mxu0 %v600_v9  ;;  %v653_v49 = vld [vmem:[%s1987_s6 + $0x50] sm:$0xff] }
  0x56   : > { %608 = vmatpush.msra.mxu3 %v577_v22  ;;  %663 = vmatpush.msrb.mxu1 %v658_v44 }
  0x57   : > { %622 = vmatpush.msrb.mxu0 %v599_v11 }
  0x58   : > { %609 = vmatpush.msra.mxu3 %v576_v24  ;;  %664 = vmatpush.msrb.mxu1 %v657_v45 }
  0x59   : > { %623 = vmatpush.msrb.mxu0 %v598_v13 }
  0x5a   : > { %610 = vmatpush.msra.mxu3 %v575_v26  ;;  %665 = vmatpush.msrb.mxu1 %v656_v46  ;;  %v1355_v26 = vld [vmem:[%s1988_s7] ss:$0 sm:$0xff] }
  0x5b   : > { %624 = vmatpush.msrb.mxu0 %v597_v15 }
  0x5c   : > { %611 = vmatpush.msra.mxu3 %v574_v28  ;;  %666 = vmatpush.msrb.mxu1 %v655_v47 }
  0x5d   : > { %625 = vmatpush.msrb.mxu0 %v596_v17 }
  0x5e   : > { %612 = vmatpush.msra.mxu3 %v573_v30  ;;  %667 = vmatpush.msrb.mxu1 %v654_v48 }
  0x5f   : > { %626 = vmatpush.msrb.mxu0 %v595_v19 }
  0x60   : > { %613 = vmatpush.msra.mxu3 %v572_v32  ;;  %668 = vmatpush.msrb.mxu1 %v653_v49 }
  0x61   : > { %627 = vmatpush.msrb.mxu0 %v594_v21 }
  0x62   : > { %614 = vmatpush.msra.mxu3 %v571_v38 }
  0x63   : > { %628 = vmatpush.msrb.mxu0 %v593_v23 }
  0x64   : > { %615 = vmatpush.msra.mxu3 %v570_v40 }
  0x65   : > { %629 = vmatpush.msrb.mxu0 %v592_v25 }
  0x66   : > { %616 = vmatpush.msra.mxu3 %v569_v42 }
  0x67   : > { %630 = vmatpush.msrb.mxu0 %v591_v27 }
  0x69   : > { %631 = vmatpush.msrb.mxu0 %v590_v29 }
  0x6b   : > { %632 = vmatpush.msrb.mxu0 %v589_v31 }
  0x6d   : > { %633 = vmatpush.msrb.mxu0 %v588_v33 }
  0x6f   : > { %634 = vmatpush.msrb.mxu0 %v587_v39 }
  0x71   : > { %635 = vmatpush.msrb.mxu0 %v586_v41 }
  0x73   : > { %636 = vmatpush.msrb.mxu0 %v585_v43 }
  0xd1   : > { %v452_v51 = vpop.f32.mrf.mxu0 }
  0xd2   : > { %v1678_v52 = vadd.f32 %v1354_v50, %v452_v51  ;;  %v652_v50 = vld [vmem:[%s1987_s6 + $0x48] sm:$0xff]  ;;  %v651_v51 = vld [vmem:[%s1987_s6 + $0x40] sm:$0xff] }
  0xd3   : > { %669 = vmatpush.msrb.mxu1 %v652_v50 }
  0xd4   : > { %503 = vmatmul.f32.vlgmr.msra.gmra.mxu1 %v1678_v52  ;;  %523 = vmatmul.f32.vlgmr.msra.gmra.mxu2 %v1678_v52 }
  0xd5   : > { %670 = vmatpush.msrb.mxu1 %v651_v51 }
 0x151   : > { %v504_v53 = vpop.f32.mrf.mxu1 }
 0x152   : > { %v528_v55 = vmul.f32 2.0, %v504_v53  ;;  %v650_v53 = vld [vmem:[%s1987_s6 + $0x38] sm:$0xff] }
 0x153   : > { %671 = vmatpush.msrb.mxu1 %v650_v53 }
 0x154   : > { %v535_v60 = vsub.f32 %v531_v56, %v528_v55 }
 0x155   : > { %672 = vmatpush.msrb.mxu1 %v649_v54 }
 0x157   : > { %v524_v58 = vpop.f32.mrf.mxu2 }
 0x158   : > { %v529_v59 = vmul.f32 2.0, %v524_v58 }
 0x15a   : > { %v536_v61 = vsub.f32 %v532_v57, %v529_v59 }
 0x15c   : > { %v540_v62 = vmin.f32 %v535_v60, %v536_v61 }
 0x15e   : > { %541 = vmin.xlane.f32.xlu0 %v540_v62 }
 0x1d1   : > { %v542_v2 = vpop.xlane.xlu0 %541 }
 0x1d2   : > { %vm543_vm0 = vcmp.eq.f32.partialorder %v535_v60, %v542_v2  ;;  %vm544_vm1 = vcmp.eq.f32.partialorder %v536_v61, %v542_v2  ;;  %v1397_v60 = vmov 1.0   ;;  %v1398_v61 = vmov 0.0  }
 0x1d3   : > { %v545_v3 = vsel %vm543_vm0, %v1686_v0, 256  ;;  %v546_v4 = vsel %vm544_vm1, %v1689_v1, 256 }
 0x1d4   : > { %vm547_vm2 = vcmp.lt.s32.totalorder %v545_v3, %v546_v4 }
 0x1d5   : > { %v548_v5 = vsel %vm547_vm2, %v545_v3, %v546_v4  ;;  %v648_v4 = vld [vmem:[%s1987_s6 + $0x28] sm:$0xff] }
 0x1d6   : > { %v550_v6 = vshra.s32 %v548_v5, 16  ;;  %v549_v34 = vand.u32 65535, %v548_v5  ;;  %673 = vmatpush.msrb.mxu1 %v648_v4  ;;  %v645_v5 = vld [vmem:[%s1987_s6 + $0x10] sm:$0xff]  ;;  %v968_v4 = vld [vmem:[%s1486_s24] sm:$0xff] }
 0x1d8   : > { %v552_v7 = vcvt.s32.f32 %v550_v6  ;;  %v551_v36 = vcvt.s32.f32 %v549_v34  ;;  %v644_v6 = vld [vmem:[%s1987_s6 + $0x8] sm:$0xff] }
 0x1da   : > { %553 = vmin.xlane.f32.xlu0 %v552_v7 }
 0x24d   : > { %v554_v35 = vpop.xlane.xlu0 %553 }
 0x24e   : > { %vm555_vm3 = vcmp.eq.f32.partialorder %v552_v7, %v554_v35  ;;  %v560_v55 = vcvt.f32.s32 %v554_v35  ;;  %v643_v7 = vld [vmem:[%s1987_s6] sm:$0xff] }
 0x24f   : > { %v556_v37 = vsel %vm555_vm3, %v551_v36, inf }
 0x250   : > { %557 = vmin.xlane.f32.xlu1 %v556_v37  ;;  %v561_v57 = vshll.u32 %v560_v55, 16 }
 0x2c3   : > { %v558_v56 = vpop.xlane.xlu1 %557 }
 0x2c4   : > { %v559_v58 = vcvt.f32.s32 %v558_v56 }
 0x2c6   : > { %v562_v59 = vadd.s32 %v561_v57, %v559_v58 }
 0x2c8   : > { %vm563_vm4 = vcmp.eq.s32.totalorder %v1686_v0, %v562_v59  ;;  %vm564_vm5 = vcmp.eq.s32.totalorder %v1689_v1, %v562_v59  ;;  %v647_v0 = vld [vmem:[%s1987_s6 + $0x20] sm:$0xff]  ;;  %v646_v1 = vld [vmem:[%s1987_s6 + $0x18] sm:$0xff] }
 0x2c9   : > { %1187 = vmatmul.msk.f32.vlgmr.msra.gmra.mxu3 %vm563_vm4, %v1397_v60  ;;  %1188 = vmatmul.msk.f32.vlgmr.msrb.gmra.mxu0 %vm564_vm5, %v1397_v60  ;;  %v1185_v62 = vsel %vm563_vm4, 1.0, %v1398_v61  ;;  %v1186_v2 = vsel %vm564_vm5, 1.0, %v1398_v61 }
 0x2ca   : > { %v1272_v3 = vpack.i.bf16 %v1186_v2, %v1185_v62  ;;  %674 = vmatpush.msrb.mxu1 %v647_v0  ;;  %v974_v0 = vld [vmem:[%s1486_s24 + $0x30] sm:$0xff] }
 0x2cc   : > { %1273 = vxpose.xlu1.b32.start.end [1/1] (short) %v1272_v3, 128  ;;  %675 = vmatpush.msrb.mxu1 %v646_v1 }
 0x2ce   : > { %676 = vmatpush.msrb.mxu1 %v645_v5 }
 0x2d0   : > { %677 = vmatpush.msrb.mxu1 %v644_v6 }
 0x2d2   : > { %678 = vmatpush.msrb.mxu1 %v643_v7 }
 0x346   : > { %v638_v8 = vpop.f32.mrf.mxu0 }
 0x34c   : > { %v618_v9 = vpop.f32.mrf.mxu3 }
 0x34d   : > { %v639_v10 = vadd.f32 %v638_v8, %v618_v9  ;;  %v990_v8 = vld [vmem:[%s1486_s24 + $0xb0] sm:$0xff]  ;;  %v980_v9 = vld [vmem:[%s1486_s24 + $0x60] sm:$0xff] }
 0x34f   : > { %641 = vst [vmem:[%s1496_s10] sm:$0xff] %v639_v10  ;;  %v642_v11 = vsub.f32 %v1678_v52, %v639_v10  ;;  %s1190_s10 = sshll.u32 %s1479_s18, 3  ;;  %v687_v52 = vshrl.u32 %v537_v63, 7  ;;  %v969_v10 = vld [vmem:[%s1486_s24 + $0x8] sm:$0xff] }
 0x350   : > { %v688_v23 = vstv %s1190_s10 }
 0x351   : > { %679 = vmatmul.f32.vlgmr.msrb.gmra.mxu1 %v642_v11  ;;  %v689_v25 = vadd.s32 %v688_v23, %v687_v52  ;;  %v975_v11 = vld [vmem:[%s1486_s24 + $0x38] sm:$0xff]  ;;  %v976_v52 = vld [vmem:[%s1486_s24 + $0x40] sm:$0xff] }
 0x353   : > { %vm690_vm6 = vcmp.lt.s32.totalorder %v689_v25, 21 }
 0x370   : > { %v1841_v12 = vpop.trf.xlu1 }
 0x371   : > { %v1275_v29 = vunpack.i.l.bf16 %v1841_v12  ;;  %v1278_v51 = vunpack.i.h.bf16 %v1841_v12 }
 0x378   : > { %v1843_v13 = vpop.trf.xlu1 }
 0x379   : > { %v1280_v34 = vunpack.i.l.bf16 %v1843_v13  ;;  %v1283_v56 = vunpack.i.h.bf16 %v1843_v13 }
 0x380   : > { %v1845_v14 = vpop.trf.xlu1 }
 0x381   : > { %v1285_v39 = vunpack.i.l.bf16 %v1845_v14  ;;  %v1288_v58 = vunpack.i.h.bf16 %v1845_v14 }
 0x388   : > { %v1847_v15 = vpop.trf.xlu1 }
 0x389   : > { %v1290_v44 = vunpack.i.l.bf16 %v1847_v15  ;;  %v1293_v60 = vunpack.i.h.bf16 %v1847_v15 }
 0x390   : > { %v1849_v16 = vpop.trf.xlu1 }
 0x391   : > { %v1295_v48 = vunpack.i.l.bf16 %v1849_v16  ;;  %v1298_v62 = vunpack.i.h.bf16 %v1849_v16 }
 0x398   : > { %v1851_v17 = vpop.trf.xlu1 }
 0x399   : > { %v1300_v53 = vunpack.i.l.bf16 %v1851_v17  ;;  %v1303_v3 = vunpack.i.h.bf16 %v1851_v17 }
 0x3a0   : > { %v1304_v18 = vpop.trf.xlu1 }
 0x3a1   : > { %v1305_v31 = vunpack.i.l.bf16 %v1304_v18  ;;  %v1308_v33 = vunpack.i.h.bf16 %v1304_v18 }
 0x3a8   : > { %v1309_v19 = vpop.trf.xlu1 }
 0x3a9   : > { %v1310_v35 = vunpack.i.l.bf16 %v1309_v19  ;;  %v1313_v37 = vunpack.i.h.bf16 %v1309_v19 }
 0x3b0   : > { %v1314_v20 = vpop.trf.xlu1 }
 0x3b1   : > { %v1315_v40 = vunpack.i.l.bf16 %v1314_v20  ;;  %v1318_v42 = vunpack.i.h.bf16 %v1314_v20  ;;  %v991_v20 = vld [vmem:[%s1486_s24 + $0xb8] sm:$0xff] }
 0x3b8   : > { %v1319_v21 = vpop.trf.xlu1 }
 0x3b9   : > { %v1320_v46 = vunpack.i.l.bf16 %v1319_v21  ;;  %v1323_v47 = vunpack.i.h.bf16 %v1319_v21  ;;  %v981_v21 = vld [vmem:[%s1486_s24 + $0x68] sm:$0xff] }
 0x3c0   : > { %v1324_v22 = vpop.trf.xlu1 }
 0x3c1   : > { %v1325_v49 = vunpack.i.l.bf16 %v1324_v22  ;;  %v1328_v50 = vunpack.i.h.bf16 %v1324_v22  ;;  %v970_v22 = vld [vmem:[%s1486_s24 + $0x10] sm:$0xff] }
 0x3c8   : > { %v1329_v24 = vpop.trf.xlu1 }
 0x3c9   : > { %v1330_v54 = vunpack.i.l.bf16 %v1329_v24  ;;  %v1333_v55 = vunpack.i.h.bf16 %v1329_v24 }
 0x3ce   : > { %v680_v27 = vpop.f32.mrf.mxu1 }
 0x3cf   : > { %v681_v28 = vadd.f32 %v1355_v26, %v680_v27 }
 0x3d0   : > { %v1334_v30 = vpop.trf.xlu1 }
 0x3d1   : > { %v1335_v32 = vunpack.i.l.bf16 %v1334_v30  ;;  %1191 = vmatpush.msk.msra.mxu0 %vm690_vm6, %v681_v28  ;;  %1226 = vmatpush.msk.msra.mxu1 %vm690_vm6, %v681_v28  ;;  %v1338_v57 = vunpack.i.h.bf16 %v1334_v30 }
 0x3d2   : > { %1227 = vmatpush.msk.msrb.mxu2 %vm690_vm6, %v681_v28  ;;  %1228 = vmatpush.msk.msrb.mxu3 %vm690_vm6, %v681_v28 }
 0x3d3   : > { %1192 = vmatmul.msk.f32.vlgmr.msra.gmra.mxu0 %vm758_vm7, %v1275_v29  ;;  %1198 = vmatmul.msk.f32.vlgmr.msra.gmra.mxu1 %vm758_vm7, %v1305_v31  ;;  %v992_v31 = vld [vmem:[%s1486_s24 + $0xc0] sm:$0xff] }
 0x3d4   : > { %1214 = vmatmul.msk.f32.vlgmr.msrb.gmra.mxu3 %vm758_vm7, %v1308_v33  ;;  %1204 = vmatmul.msk.f32.vlgmr.msrb.gmra.mxu2 %vm758_vm7, %v1335_v32  ;;  %v982_v32 = vld [vmem:[%s1486_s24 + $0x70] sm:$0xff]  ;;  %v971_v33 = vld [vmem:[%s1486_s24 + $0x18] sm:$0xff] }
 0x3d8   : > { %v1339_v63 = vpop.trf.xlu1 }
 0x3d9   : > { %v1340_v36 = vunpack.i.l.bf16 %v1339_v63  ;;  %v1343_v59 = vunpack.i.h.bf16 %v1339_v63  ;;  %v977_v63 = vld [vmem:[%s1486_s24 + $0x48] sm:$0xff] }
 0x3db   : > { %1193 = vmatmul.msk.f32.gmra.mxu0 %vm758_vm7, %v1280_v34  ;;  %1199 = vmatmul.msk.f32.gmra.mxu1 %vm758_vm7, %v1310_v35 }
 0x3dc   : > { %1215 = vmatmul.msk.f32.gmra.mxu3 %vm758_vm7, %v1313_v37  ;;  %1205 = vmatmul.msk.f32.gmra.mxu2 %vm758_vm7, %v1340_v36 }
 0x3e0   : > { %v1344_v38 = vpop.trf.xlu1 }
 0x3e1   : > { %v1345_v41 = vunpack.i.l.bf16 %v1344_v38  ;;  %v1348_v61 = vunpack.i.h.bf16 %v1344_v38 }
 0x3e3   : > { %1194 = vmatmul.msk.f32.gmra.mxu0 %vm758_vm7, %v1285_v39  ;;  %1200 = vmatmul.msk.f32.gmra.mxu1 %vm758_vm7, %v1315_v40 }
 0x3e4   : > { %1216 = vmatmul.msk.f32.gmra.mxu3 %vm758_vm7, %v1318_v42  ;;  %1206 = vmatmul.msk.f32.gmra.mxu2 %vm758_vm7, %v1345_v41  ;;  %v993_v42 = vld [vmem:[%s1486_s24 + $0xc8] sm:$0xff] }
 0x3e8   : > { %v1349_v43 = vpop.trf.xlu1 }
 0x3e9   : > { %v1350_v45 = vunpack.i.l.bf16 %v1349_v43  ;;  %v1353_v2 = vunpack.i.h.bf16 %v1349_v43  ;;  %v983_v43 = vld [vmem:[%s1486_s24 + $0x78] sm:$0xff] }
 0x3eb   : > { %1195 = vmatmul.msk.f32.gmra.mxu0 %vm758_vm7, %v1290_v44  ;;  %1201 = vmatmul.msk.f32.gmra.mxu1 %vm758_vm7, %v1320_v46  ;;  %v972_v44 = vld [vmem:[%s1486_s24 + $0x20] sm:$0xff] }
 0x3ec   : > { %1217 = vmatmul.msk.f32.gmra.mxu3 %vm758_vm7, %v1323_v47  ;;  %1207 = vmatmul.msk.f32.gmra.mxu2 %vm758_vm7, %v1350_v45  ;;  %v978_v45 = vld [vmem:[%s1486_s24 + $0x50] sm:$0xff] }
 0x3f3   : > { %1196 = vmatmul.msk.f32.gmra.mxu0 %vm758_vm7, %v1295_v48  ;;  %1202 = vmatmul.msk.f32.gmra.mxu1 %vm758_vm7, %v1325_v49 }
 0x3f4   : > { %1218 = vmatmul.msk.f32.gmra.mxu3 %vm758_vm7, %v1328_v50  ;;  %1208 = vmatmul.msk.f32.gmra.mxu2 %vm758_vm7, %v1278_v51 }
 0x3fb   : > { %1197 = vmatmul.msk.f32.gmra.mxu0 %vm758_vm7, %v1300_v53  ;;  %1203 = vmatmul.msk.f32.gmra.mxu1 %vm758_vm7, %v1330_v54 }
 0x3fc   : > { %1219 = vmatmul.msk.f32.gmra.mxu3 %vm758_vm7, %v1333_v55  ;;  %1209 = vmatmul.msk.f32.gmra.mxu2 %vm758_vm7, %v1283_v56  ;;  %v994_v55 = vld [vmem:[%s1486_s24 + $0xd0] sm:$0xff]  ;;  %v984_v56 = vld [vmem:[%s1486_s24 + $0x80] sm:$0xff] }
 0x404   : > { %1220 = vmatmul.msk.f32.gmra.mxu3 %vm758_vm7, %v1338_v57  ;;  %1210 = vmatmul.msk.f32.gmra.mxu2 %vm758_vm7, %v1288_v58  ;;  %v973_v57 = vld [vmem:[%s1486_s24 + $0x28] sm:$0xff]  ;;  %v979_v58 = vld [vmem:[%s1486_s24 + $0x58] sm:$0xff] }
 0x40c   : > { %1221 = vmatmul.msk.f32.gmra.mxu3 %vm758_vm7, %v1343_v59  ;;  %1211 = vmatmul.msk.f32.gmra.mxu2 %vm758_vm7, %v1293_v60 }
 0x414   : > { %1222 = vmatmul.msk.f32.gmra.mxu3 %vm758_vm7, %v1348_v61  ;;  %1212 = vmatmul.msk.f32.gmra.mxu2 %vm758_vm7, %v1298_v62 }
 0x41c   : > { %1223 = vmatmul.msk.f32.gmra.mxu3 %vm758_vm7, %v1353_v2  ;;  %1213 = vmatmul.msk.f32.gmra.mxu2 %vm758_vm7, %v1303_v3 }
 0x450   : > { %v872_v1 = vpop.f32.mrf.mxu0  ;;  %v890_v5 = vpop.f32.mrf.mxu1 }
 0x451   : > { %v1000_v6 = vadd.f32 %v968_v4, %v872_v1  ;;  %v1006_v7 = vadd.f32 %v974_v0, %v890_v5  ;;  %v995_v1 = vld [vmem:[%s1486_s24 + $0xd8] sm:$0xff]  ;;  %v985_v5 = vld [vmem:[%s1486_s24 + $0x88] sm:$0xff] }
 0x453   : > { %1032 = vst [vmem:[%s1486_s24] sm:$0xff] %v1000_v6 }
 0x454   : > { %1038 = vst [vmem:[%s1486_s24 + $0x30] sm:$0xff] %v1006_v7 }
 0x457   : > { %v938_v12 = vpop.f32.mrf.mxu3  ;;  %v908_v13 = vpop.f32.mrf.mxu2 }
 0x458   : > { %v1022_v14 = vadd.f32 %v990_v8, %v938_v12  ;;  %v1012_v15 = vadd.f32 %v980_v9, %v908_v13  ;;  %v875_v16 = vpop.f32.mrf.mxu0  ;;  %v893_v17 = vpop.f32.mrf.mxu1 }
 0x459   : > { %v1001_v18 = vadd.f32 %v969_v10, %v875_v16  ;;  %v1007_v19 = vadd.f32 %v975_v11, %v893_v17  ;;  %v996_v10 = vld [vmem:[%s1486_s24 + $0xe0] sm:$0xff]  ;;  %v986_v11 = vld [vmem:[%s1486_s24 + $0x90] sm:$0xff]  ;;  %v997_v16 = vld [vmem:[%s1486_s24 + $0xe8] sm:$0xff] }
 0x45a   : > { %1054 = vst [vmem:[%s1486_s24 + $0xb0] sm:$0xff] %v1022_v14  ;;  %v987_v17 = vld [vmem:[%s1486_s24 + $0x98] sm:$0xff] }
 0x45b   : > { %1044 = vst [vmem:[%s1486_s24 + $0x60] sm:$0xff] %v1012_v15 }
 0x45c   : > { %1033 = vst [vmem:[%s1486_s24 + $0x8] sm:$0xff] %v1001_v18 }
 0x45d   : > { %1039 = vst [vmem:[%s1486_s24 + $0x38] sm:$0xff] %v1007_v19 }
 0x45f   : > { %v941_v23 = vpop.f32.mrf.mxu3  ;;  %v911_v24 = vpop.f32.mrf.mxu2 }
 0x460   : > { %v1023_v25 = vadd.f32 %v991_v20, %v941_v23  ;;  %v1013_v26 = vadd.f32 %v981_v21, %v911_v24  ;;  %v878_v27 = vpop.f32.mrf.mxu0  ;;  %v896_v28 = vpop.f32.mrf.mxu1 }
 0x461   : > { %v1002_v29 = vadd.f32 %v970_v22, %v878_v27  ;;  %v1008_v30 = vadd.f32 %v976_v52, %v896_v28  ;;  %v998_v22 = vld [vmem:[%s1486_s24 + $0xf0] sm:$0xff]  ;;  %v988_v52 = vld [vmem:[%s1486_s24 + $0xa0] sm:$0xff]  ;;  %v999_v27 = vld [vmem:[%s1486_s24 + $0xf8] sm:$0xff] }
 0x462   : > { %1055 = vst [vmem:[%s1486_s24 + $0xb8] sm:$0xff] %v1023_v25  ;;  %v989_v28 = vld [vmem:[%s1486_s24 + $0xa8] sm:$0xff] }
 0x463   : > { %1045 = vst [vmem:[%s1486_s24 + $0x68] sm:$0xff] %v1013_v26 }
 0x464   : > { %1034 = vst [vmem:[%s1486_s24 + $0x10] sm:$0xff] %v1002_v29 }
 0x465   : > { %1040 = vst [vmem:[%s1486_s24 + $0x40] sm:$0xff] %v1008_v30 }
 0x467   : > { %v944_v34 = vpop.f32.mrf.mxu3  ;;  %v914_v35 = vpop.f32.mrf.mxu2 }
 0x468   : > { %v1024_v36 = vadd.f32 %v992_v31, %v944_v34  ;;  %v1014_v37 = vadd.f32 %v982_v32, %v914_v35  ;;  %v881_v38 = vpop.f32.mrf.mxu0  ;;  %v899_v39 = vpop.f32.mrf.mxu1 }
 0x469   : > { %v1003_v40 = vadd.f32 %v971_v33, %v881_v38  ;;  %v1009_v41 = vadd.f32 %v977_v63, %v899_v39 }
 0x46a   : > { %1056 = vst [vmem:[%s1486_s24 + $0xc0] sm:$0xff] %v1024_v36 }
 0x46b   : > { %1046 = vst [vmem:[%s1486_s24 + $0x70] sm:$0xff] %v1014_v37 }
 0x46c   : > { %1035 = vst [vmem:[%s1486_s24 + $0x18] sm:$0xff] %v1003_v40 }
 0x46d   : > { %1041 = vst [vmem:[%s1486_s24 + $0x48] sm:$0xff] %v1009_v41 }
 0x46f   : > { %v947_v46 = vpop.f32.mrf.mxu3  ;;  %v917_v47 = vpop.f32.mrf.mxu2 }
 0x470   : > { %v1025_v48 = vadd.f32 %v993_v42, %v947_v46  ;;  %v1015_v49 = vadd.f32 %v983_v43, %v917_v47  ;;  %v884_v50 = vpop.f32.mrf.mxu0  ;;  %v902_v51 = vpop.f32.mrf.mxu1 }
 0x471   : > { %v1004_v53 = vadd.f32 %v972_v44, %v884_v50  ;;  %v1010_v54 = vadd.f32 %v978_v45, %v902_v51 }
 0x472   : > { %1057 = vst [vmem:[%s1486_s24 + $0xc8] sm:$0xff] %v1025_v48 }
 0x473   : > { %1047 = vst [vmem:[%s1486_s24 + $0x78] sm:$0xff] %v1015_v49 }
 0x474   : > { %1036 = vst [vmem:[%s1486_s24 + $0x20] sm:$0xff] %v1004_v53 }
 0x475   : > { %1042 = vst [vmem:[%s1486_s24 + $0x50] sm:$0xff] %v1010_v54 }
 0x477   : > { %v950_v59 = vpop.f32.mrf.mxu3  ;;  %v920_v60 = vpop.f32.mrf.mxu2 }
 0x478   : > { %v1026_v61 = vadd.f32 %v994_v55, %v950_v59  ;;  %v1016_v62 = vadd.f32 %v984_v56, %v920_v60  ;;  %v887_v2 = vpop.f32.mrf.mxu0  ;;  %v905_v3 = vpop.f32.mrf.mxu1 }
 0x479   : > { %v1005_v4 = vadd.f32 %v973_v57, %v887_v2  ;;  %v1011_v0 = vadd.f32 %v979_v58, %v905_v3 }
 0x47a   : > { %1058 = vst [vmem:[%s1486_s24 + $0xd0] sm:$0xff] %v1026_v61 }
 0x47b   : > { %1048 = vst [vmem:[%s1486_s24 + $0x80] sm:$0xff] %v1016_v62 }
 0x47c   : > { %1037 = vst [vmem:[%s1486_s24 + $0x28] sm:$0xff] %v1005_v4 }
 0x47d   : > { %1043 = vst [vmem:[%s1486_s24 + $0x58] sm:$0xff] %v1011_v0 }
 0x47f   : > { %v953_v6 = vpop.f32.mrf.mxu3  ;;  %v923_v7 = vpop.f32.mrf.mxu2 }
 0x480   : > { %v1027_v8 = vadd.f32 %v995_v1, %v953_v6  ;;  %v1017_v9 = vadd.f32 %v985_v5, %v923_v7 }
 0x482   : > { %1059 = vst [vmem:[%s1486_s24 + $0xd8] sm:$0xff] %v1027_v8 }
 0x483   : > { %1049 = vst [vmem:[%s1486_s24 + $0x88] sm:$0xff] %v1017_v9 }
 0x487   : > { %v956_v12 = vpop.f32.mrf.mxu3  ;;  %v926_v13 = vpop.f32.mrf.mxu2 }
 0x488   : > { %v1028_v14 = vadd.f32 %v996_v10, %v956_v12  ;;  %v1018_v15 = vadd.f32 %v986_v11, %v926_v13 }
 0x48a   : > { %1060 = vst [vmem:[%s1486_s24 + $0xe0] sm:$0xff] %v1028_v14 }
 0x48b   : > { %1050 = vst [vmem:[%s1486_s24 + $0x90] sm:$0xff] %v1018_v15 }
 0x48f   : > { %v959_v18 = vpop.f32.mrf.mxu3  ;;  %v929_v19 = vpop.f32.mrf.mxu2 }
 0x490   : > { %v1029_v20 = vadd.f32 %v997_v16, %v959_v18  ;;  %v1019_v21 = vadd.f32 %v987_v17, %v929_v19 }
 0x492   : > { %1061 = vst [vmem:[%s1486_s24 + $0xe8] sm:$0xff] %v1029_v20 }
 0x493   : > { %1051 = vst [vmem:[%s1486_s24 + $0x98] sm:$0xff] %v1019_v21 }
 0x497   : > { %v962_v23 = vpop.f32.mrf.mxu3  ;;  %v932_v24 = vpop.f32.mrf.mxu2 }
 0x498   : > { %v1030_v25 = vadd.f32 %v998_v22, %v962_v23  ;;  %v1020_v26 = vadd.f32 %v988_v52, %v932_v24 }
 0x49a   : > { %1062 = vst [vmem:[%s1486_s24 + $0xf0] sm:$0xff] %v1030_v25 }
 0x49b   : > { %1052 = vst [vmem:[%s1486_s24 + $0xa0] sm:$0xff] %v1020_v26 }
 0x49f   : > { %v965_v29 = vpop.f32.mrf.mxu3  ;;  %v935_v30 = vpop.f32.mrf.mxu2 }
 0x4a0   : > { %v1031_v31 = vadd.f32 %v999_v27, %v965_v29  ;;  %v1021_v32 = vadd.f32 %v989_v28, %v935_v30 }
 0x4a2   : > { %1063 = vst [vmem:[%s1486_s24 + $0xf8] sm:$0xff] %v1031_v31 }
 0x4a3   : > { %1053 = vst [vmem:[%s1486_s24 + $0xa8] sm:$0xff] %v1021_v32 }
 0x4a4 PF: > { %s20_s13 = sadd.s32 1, %s1394_s13   ;;  %s1991_s30 = smov %s1386_s11 }
 0x4a5   : > { %p17_p8 = scmp.ge.s32.totalorder %s20_s13, 6   ;;  %s1992_s10 = smov %s1390_s12 }
 0x4a6   : > { %s1993_s11 = smov %s1996_s14  ;;  %s1994_s12 = smov %s2000_s15 }
 0x4a7   :  { %19 = sbr.rel (!%p17_p8) target bundleno = 3 (0x3), region = 98 }

</bundles_post_ra>
